<compile_context>
chip_gen: v6e
topology: v6e:2x2x1
jax: 0.10.0
libtpu: 0.0.40
codegen_flags: <defaults>
</compile_context>

<pallas_src>
import jax
import jax.numpy as jnp
from jax import lax
from jax.experimental import pallas as pl
from jax.experimental.pallas import tpu as pltpu

_STAT_LANES = 128  # lane-padded stats: [inter, p_sum, t_sum, ce_sum, 0, ...]


def ce_dice_loss_v2(net_output, target, *, dice_weights, smooth=1e-5,
                    tile_bytes=8 * 1024 * 1024, sub_lanes=8192):
    """Forward pass of CE_Dice_lossv2(dice_kwargs={'weights': dice_weights}).

    net_output : (N, C, H, W) raw logits (no nonlinearity), f32 or bf16
                 (kept in native dtype; math is done in f32 in-kernel)
    target     : (N, H, W) or (N, 1, H, W) integer class indices
    dice_weights : per-class weights (len C), as in MultiDiceLoss(weights=...)
    """
    N, C, H, W = net_output.shape
    HW = H * W
    w = jnp.asarray(dice_weights, jnp.float32)
    assert w.shape == (C,), "dice_weights must have one entry per class"

    x = net_output.reshape(N, C, HW)                     # native dtype, no pad
    label_dtype = jnp.int8 if C <= 127 else jnp.int32    # 1 B/pixel when possible
    labels = jnp.asarray(target).reshape(N, 1, HW).astype(label_dtype)

    # --- tiling ------------------------------------------------------------
    elt = jnp.dtype(x.dtype).itemsize
    lab_elt = jnp.dtype(labels.dtype).itemsize
    t_lanes = max(128, (tile_bytes // (C * elt)) // 128 * 128)
    t_lanes = min(t_lanes, pl.cdiv(HW, 128) * 128)
    sub = max(128, (min(sub_lanes, t_lanes) // 128) * 128)   # compute sub-chunk
    t_lanes = max(sub, (t_lanes // sub) * sub)                # sub divides tile
    num_sub = t_lanes // sub
    num_tiles = pl.cdiv(HW, t_lanes)

    # v7x megacore: when N is odd (in particular N == 1) split the HW-tile
    # axis into an outer size-2 parallel axis so both TensorCores get work.
    split = 2 if (N % 2 == 1 and num_tiles >= 2) else 1
    tiles_per_split = pl.cdiv(num_tiles, split)
    grid = (split, N, tiles_per_split)

    # VMEM budget: double-buffered I/O tiles + accumulator + bounded compute
    # working set (inner sub-chunk loop keeps full-(C,T) f32 temps small).
    x_tile = C * t_lanes * elt
    lab_tile = t_lanes * lab_elt
    acc_tile = C * _STAT_LANES * 4
    compute_ws = 8 * C * sub * 4
    vmem_limit = int(min(max(2 * (x_tile + lab_tile + acc_tile)
                             + compute_ws + (4 << 20), 16 << 20), 48 << 20))

    cost = pl.CostEstimate(
        flops=12 * N * C * HW,
        transcendentals=N * HW * (C + 2),
        bytes_accessed=int(x.size * elt + labels.size * lab_elt
                           + split * N * C * _STAT_LANES * 4),
    )

    # --- kernel ------------------------------------------------------------
    def kernel(x_ref, lab_ref, out_ref):
        k = pl.program_id(2)

        @pl.when(k == 0)
        def _init():
            out_ref[...] = jnp.zeros_like(out_ref)

        # Logical (unclamped) tile index -> global pixel offset of this tile.
        tile_start = (pl.program_id(0) * tiles_per_split + k) * t_lanes

        def chunk(j, acc):
            inter_a, psum_a, tsum_a, ce_a = acc
            off = pl.multiple_of(j * sub, sub)
            xv = x_ref[0, :, pl.ds(off, sub)].astype(jnp.float32)    # (C, sub)
            lab = lab_ref[0, :, pl.ds(off, sub)].astype(jnp.int32)   # (1, sub)

            # Bounds mask for the ragged tail / duplicated clamped tiles.
            pix = tile_start + off + lax.broadcasted_iota(jnp.int32, (1, sub), 1)
            inb = pix < HW                                           # (1, sub)
            valid = inb.astype(jnp.float32)
            xv = jnp.where(inb, xv, 0.0)      # before exp: no inf/NaN from pad
            lab = jnp.where(inb, lab, -1)     # before compare: no fake one-hot

            # One-hot targets built in-registers (no HBM one-hot traffic).
            cls = lax.broadcasted_iota(jnp.int32, (C, sub), 0)
            t = (lab == cls).astype(jnp.float32)                     # (C, sub)

            # Hoist sum(t*x) before the softmax (frees x early; ce uses it).
            tx_sum = jnp.sum(t * xv, axis=1, keepdims=True)          # (C, 1)
            t_sum = jnp.sum(t, axis=1, keepdims=True)                # (C, 1)

            # Channel softmax / log-sum-exp; one reciprocal per pixel row,
            # validity folded into it (p == 0 on out-of-bounds pixels).
            m = jnp.max(xv, axis=0, keepdims=True)                   # (1, sub)
            e = jnp.exp(xv - m)                                      # (C, sub)
            s = jnp.sum(e, axis=0, keepdims=True)                    # (1, sub)
            inv = pl.reciprocal(s, approx=True) * valid              # (1, sub)
            p = e * inv                                              # (C, sub)
            lse = m + jnp.log(s)                                     # (1, sub)

            inter = jnp.sum(p * t, axis=1, keepdims=True)            # (C, 1)
            p_sum = jnp.sum(p, axis=1, keepdims=True)                # (C, 1)
            ce = jnp.sum(t * lse, axis=1, keepdims=True) - tx_sum    # (C, 1)
            return (inter_a + inter, psum_a + p_sum, tsum_a + t_sum, ce_a + ce)

        zero = jnp.zeros((C, 1), jnp.float32)
        init = (zero, zero, zero, zero)
        if num_sub == 1:
            inter, p_sum, t_sum, ce_sum = chunk(0, init)
        else:
            inter, p_sum, t_sum, ce_sum = lax.fori_loop(
                0, num_sub, chunk, init, unroll=(num_sub <= 8))

        # Merge into one lane-padded (C, 128) tile -> single unmasked store.
        lane = lax.broadcasted_iota(jnp.int32, (C, _STAT_LANES), 1)
        stats = (jnp.where(lane == 0, inter, 0.0)
                 + jnp.where(lane == 1, p_sum, 0.0)
                 + jnp.where(lane == 2, t_sum, 0.0)
                 + jnp.where(lane == 3, ce_sum, 0.0))
        out_ref[...] += stats[None, None]

    # --- specs / call -------------------------------------------------------
    def _hw_idx(s, k):
        idx = s * tiles_per_split + k
        if split > 1:
            # Clamp the DMA to an in-bounds block; the kernel masks the
            # duplicated (logical-index >= num_tiles) tile's contribution.
            idx = jnp.minimum(idx, num_tiles - 1)
        return idx

    stats = pl.pallas_call(
        kernel,
        out_shape=jax.ShapeDtypeStruct((split, N, C, _STAT_LANES), jnp.float32),
        grid=grid,
        in_specs=[
            pl.BlockSpec((1, C, t_lanes), lambda s, n, k: (n, 0, _hw_idx(s, k))),
            pl.BlockSpec((1, 1, t_lanes), lambda s, n, k: (n, 0, _hw_idx(s, k))),
        ],
        out_specs=pl.BlockSpec((1, 1, C, _STAT_LANES), lambda s, n, k: (s, n, 0, 0)),
        compiler_params=pltpu.CompilerParams(
            dimension_semantics=("parallel", "parallel", "arbitrary"),
            vmem_limit_bytes=vmem_limit,
        ),
        cost_estimate=cost,
    )(x, labels)

    stats = jnp.sum(stats, axis=0)            # merge the two megacore halves
    inter = stats[:, :, 0]
    p_sum = stats[:, :, 1]
    t_sum = stats[:, :, 2]
    ce_sum = stats[:, :, 3]

    # MultiDiceLoss over the softmax probabilities.
    dice = (2.0 * inter + smooth) / (p_sum + t_sum + smooth)   # (N, C)
    dice_loss_per_class = 1.0 - jnp.mean(dice, axis=0)         # (C,)
    dc_loss = jnp.sum(w * dice_loss_per_class) / jnp.sum(w)

    # CrossentropyND: mean cross-entropy over all N*H*W pixels.
    ce_loss = jnp.sum(ce_sum) / jnp.float32(N * HW)

    return ce_loss + dc_loss


def _reference(net_output, target, dice_weights, smooth=1e-5):
    """Pure-JAX reference mirroring CE_Dice_lossv2.forward, for sanity checks."""
    N, C = net_output.shape[:2]
    x = net_output.reshape(N, C, -1).astype(jnp.float32)
    lab = jnp.asarray(target).reshape(N, -1).astype(jnp.int32)

    logp = jax.nn.log_softmax(x, axis=1)
    ce = -jnp.mean(jnp.take_along_axis(logp, lab[:, None, :], axis=1))

    p = jax.nn.softmax(x, axis=1)
    onehot = jax.nn.one_hot(lab, C, axis=1, dtype=jnp.float32)   # (N, C, HW)
    inter = jnp.sum(p * onehot, axis=-1)
    dice = (2.0 * inter + smooth) / (jnp.sum(p, -1) + jnp.sum(onehot, -1) + smooth)
    dlpc = 1.0 - jnp.mean(dice, axis=0)
    wgt = jnp.asarray(dice_weights, jnp.float32)
    dc = jnp.sum(wgt * dlpc) / jnp.sum(wgt)
    return ce + dc


if __name__ == "__main__":
    key = jax.random.PRNGKey(0)
    k1, k2, k3, k4, k5, k6 = jax.random.split(key, 6)

    N, C, H, W = 2, 4, 16, 16
    net_output = jax.random.normal(k1, (N, C, H, W), jnp.float32)
    target = jax.random.randint(k2, (N, H, W), 0, C, dtype=jnp.int32)
    dice_weights = [1.0, 2.0, 3.0, 4.0]
    TOL = dict(rtol=2e-3, atol=2e-3)   # approx reciprocal perturbs ~1e-4 rel

    ref = _reference(net_output, target, dice_weights)

    # 1) Default tiling, small sub-chunks -> exercises the inner fori_loop.
    loss = ce_dice_loss_v2(net_output, target, dice_weights=dice_weights,
                           sub_lanes=128)
    loss = jax.block_until_ready(loss)
    assert jnp.allclose(loss, ref, **TOL), (loss, ref)

    # 2) Force multiple HW tiles to exercise the grid-axis accumulation.
    loss_tiled = ce_dice_loss_v2(net_output, target, dice_weights=dice_weights,
                                 tile_bytes=128 * C * 4)
    loss_tiled = jax.block_until_ready(loss_tiled)
    assert jnp.allclose(loss_tiled, ref, **TOL), (loss_tiled, ref)

    # 3) Non-128-multiple spatial size -> in-kernel bounds mask (no jnp.pad).
    Hp, Wp = 10, 13
    net_output_p = jax.random.normal(k3, (N, C, Hp, Wp), jnp.float32)
    target_p = jax.random.randint(k4, (N, Hp, Wp), 0, C, dtype=jnp.int32)
    ref_p = _reference(net_output_p, target_p, dice_weights)
    loss_p = ce_dice_loss_v2(net_output_p, target_p, dice_weights=dice_weights)
    loss_p = jax.block_until_ready(loss_p)
    assert jnp.allclose(loss_p, ref_p, **TOL), (loss_p, ref_p)

    # 4) N == 1 with several tiles -> exercises the size-2 parallel split
    #    (v7x megacore path), including the clamped+masked duplicate tile.
    net_output_1 = jax.random.normal(k5, (1, C, 16, 24), jnp.float32)
    target_1 = jax.random.randint(k6, (1, 16, 24), 0, C, dtype=jnp.int32)
    ref_1 = _reference(net_output_1, target_1, dice_weights)
    loss_1 = ce_dice_loss_v2(net_output_1, target_1, dice_weights=dice_weights,
                             tile_bytes=128 * C * 4)
    loss_1 = jax.block_until_ready(loss_1)
    assert jnp.allclose(loss_1, ref_1, **TOL), (loss_1, ref_1)

    print("KERNEL_OK")
</pallas_src>

<mosaic_0001>
module attributes {stable_mosaic.version = 11 : i64} {
  func.func @kernel(%arg0: i32, %arg1: i32, %arg2: i32, %arg3: memref<1x4x256xf32, #tpu.memory_space<vmem>>, %arg4: memref<1x1x256xi8, #tpu.memory_space<vmem>>, %arg5: memref<1x1x4x128xf32, #tpu.memory_space<vmem>>) attributes {dimension_semantics = [#tpu.dimension_semantics<parallel>, #tpu.dimension_semantics<parallel>, #tpu.dimension_semantics<arbitrary>], iteration_bounds = array<i64: 1, 2, 1>, scalar_prefetch = 0 : i64, scratch_operands = 0 : i64, tpu.core_type = #tpu.core_type<tc>, window_params = [{transform_indices = @transform_0, window_bounds = array<i64: 1, 4, 256>}, {transform_indices = @transform_1, window_bounds = array<i64: 1, 1, 256>}, {transform_indices = @transform_2, window_bounds = array<i64: 1, 1, 4, 128>}]} {
    %c0_i32 = arith.constant 0 : i32
    %0 = arith.cmpi eq, %arg2, %c0_i32 : i32
    %1 = arith.extui %0 : i1 to i32
    %c0_i32_0 = arith.constant 0 : i32
    %2 = arith.cmpi ne, %1, %c0_i32_0 : i32
    scf.if %2 {
      %cst_45 = arith.constant 0.000000e+00 : f32
      %159 = vector.broadcast %cst_45 : f32 to vector<1x1x4x128xf32>
      %c0_46 = arith.constant 0 : index
      %c0_47 = arith.constant 0 : index
      %c0_48 = arith.constant 0 : index
      %c0_49 = arith.constant 0 : index
      %160 = vector.load %arg5[%c0_46, %c0_47, %c0_48, %c0_49] : memref<1x1x4x128xf32, #tpu.memory_space<vmem>>, vector<1x1x4x128xf32>
      tpu.vector_store %arg5[%c0_46, %c0_47, %c0_48, %c0_49], %159 {strides = array<i32>} : memref<1x1x4x128xf32, #tpu.memory_space<vmem>>, vector<1x1x4x128xf32>,
    } else {
    }
    %c1_i32 = arith.constant 1 : i32
    %3 = arith.muli %arg0, %c1_i32 : i32
    %4 = arith.addi %3, %arg2 : i32
    %c256_i32 = arith.constant 256 : i32
    %5 = arith.muli %4, %c256_i32 : i32
    %cst = arith.constant 0.000000e+00 : f32
    %6 = vector.broadcast %cst : f32 to vector<4x1xf32>
    %c0_i32_1 = arith.constant 0 : i32
    %c128_i32 = arith.constant 128 : i32
    %7 = arith.muli %c0_i32_1, %c128_i32 : i32
    %8 = tpu.assume_multiple %7, 128 : i32
    %c0 = arith.constant 0 : index
    %c0_2 = arith.constant 0 : index
    %9 = arith.index_cast %8 : i32 to index
    %10 = vector.load %arg3[%c0, %c0_2, %9] : memref<1x4x256xf32, #tpu.memory_space<vmem>>, vector<1x4x128xf32>
    %11 = vector.shape_cast %10 : vector<1x4x128xf32> to vector<4x128xf32>
    %c0_3 = arith.constant 0 : index
    %c0_4 = arith.constant 0 : index
    %12 = arith.index_cast %8 : i32 to index
    %13 = vector.load %arg4[%c0_3, %c0_4, %12] : memref<1x1x256xi8, #tpu.memory_space<vmem>>, vector<1x1x128xi8>
    %14 = vector.shape_cast %13 : vector<1x1x128xi8> to vector<1x128xi8>
    %15 = arith.extsi %14 : vector<1x128xi8> to vector<1x128xi32>
    %16 = arith.addi %5, %8 : i32
    %17 = tpu.iota {dimensions = array<i32: 1>} : vector<1x128xi32>
    %18 = vector.broadcast %16 : i32 to vector<1x128xi32>
    %19 = arith.addi %18, %17 : vector<1x128xi32>
    %c256_i32_5 = arith.constant 256 : i32
    %20 = vector.broadcast %c256_i32_5 : i32 to vector<1x128xi32>
    %21 = arith.cmpi slt, %19, %20 : vector<1x128xi32>
    %22 = arith.extui %21 : vector<1x128xi1> to vector<1x128xi32>
    %23 = arith.sitofp %22 : vector<1x128xi32> to vector<1x128xf32>
    %cst_6 = arith.constant 0.000000e+00 : f32
    %24 = vector.shape_cast %21 : vector<1x128xi1> to vector<1x128xi1>
    %25 = vector.broadcast %24 : vector<1x128xi1> to vector<4x128xi1>
    %26 = vector.broadcast %cst_6 : f32 to vector<4x128xf32>
    %27 = arith.select %25, %11, %26 : vector<4x128xi1>, vector<4x128xf32>
    %c-1_i32 = arith.constant -1 : i32
    %28 = vector.broadcast %c-1_i32 : i32 to vector<1x128xi32>
    %29 = arith.select %21, %15, %28 : vector<1x128xi1>, vector<1x128xi32>
    %30 = tpu.iota {dimensions = array<i32: 0>} : vector<4x128xi32>
    %31 = vector.broadcast %29 : vector<1x128xi32> to vector<4x128xi32>
    %32 = arith.cmpi eq, %31, %30 : vector<4x128xi32>
    %33 = arith.extui %32 : vector<4x128xi1> to vector<4x128xi32>
    %34 = arith.sitofp %33 : vector<4x128xi32> to vector<4x128xf32>
    %35 = arith.mulf %34, %27 : vector<4x128xf32>
    %cst_7 = arith.constant dense<0.000000e+00> : vector<4xf32>
    %36 = vector.multi_reduction <add>, %35, %cst_7 [1] : vector<4x128xf32> to vector<4xf32>
    %37 = vector.shape_cast %36 : vector<4xf32> to vector<4x1xf32>
    %cst_8 = arith.constant dense<0.000000e+00> : vector<4xf32>
    %38 = vector.multi_reduction <add>, %34, %cst_8 [1] : vector<4x128xf32> to vector<4xf32>
    %39 = vector.shape_cast %38 : vector<4xf32> to vector<4x1xf32>
    %cst_9 = arith.constant dense<0xFF800000> : vector<128xf32>
    %40 = vector.multi_reduction <maximumf>, %27, %cst_9 [0] : vector<4x128xf32> to vector<128xf32>
    %41 = vector.shape_cast %40 : vector<128xf32> to vector<1x128xf32>
    %42 = vector.broadcast %41 : vector<1x128xf32> to vector<4x128xf32>
    %43 = arith.subf %27, %42 : vector<4x128xf32>
    %44 = math.exp %43 : vector<4x128xf32>
    %cst_10 = arith.constant dense<0.000000e+00> : vector<128xf32>
    %45 = vector.multi_reduction <add>, %44, %cst_10 [0] : vector<4x128xf32> to vector<128xf32>
    %46 = vector.shape_cast %45 : vector<128xf32> to vector<1x128xf32>
    %47 = tpu.reciprocal %46 {approx = true} : vector<1x128xf32> -> vector<1x128xf32>
    %48 = arith.mulf %47, %23 : vector<1x128xf32>
    %49 = vector.broadcast %48 : vector<1x128xf32> to vector<4x128xf32>
    %50 = arith.mulf %44, %49 : vector<4x128xf32>
    %51 = math.log %46 : vector<1x128xf32>
    %52 = arith.addf %41, %51 : vector<1x128xf32>
    %53 = arith.mulf %50, %34 : vector<4x128xf32>
    %cst_11 = arith.constant dense<0.000000e+00> : vector<4xf32>
    %54 = vector.multi_reduction <add>, %53, %cst_11 [1] : vector<4x128xf32> to vector<4xf32>
    %55 = vector.shape_cast %54 : vector<4xf32> to vector<4x1xf32>
    %cst_12 = arith.constant dense<0.000000e+00> : vector<4xf32>
    %56 = vector.multi_reduction <add>, %50, %cst_12 [1] : vector<4x128xf32> to vector<4xf32>
    %57 = vector.shape_cast %56 : vector<4xf32> to vector<4x1xf32>
    %58 = vector.broadcast %52 : vector<1x128xf32> to vector<4x128xf32>
    %59 = arith.mulf %34, %58 : vector<4x128xf32>
    %cst_13 = arith.constant dense<0.000000e+00> : vector<4xf32>
    %60 = vector.multi_reduction <add>, %59, %cst_13 [1] : vector<4x128xf32> to vector<4xf32>
    %61 = vector.shape_cast %60 : vector<4xf32> to vector<4x1xf32>
    %62 = arith.subf %61, %37 : vector<4x1xf32>
    %63 = arith.addf %6, %55 : vector<4x1xf32>
    %64 = arith.addf %6, %57 : vector<4x1xf32>
    %65 = arith.addf %6, %39 : vector<4x1xf32>
    %66 = arith.addf %6, %62 : vector<4x1xf32>
    %c1_i32_14 = arith.constant 1 : i32
    %c128_i32_15 = arith.constant 128 : i32
    %67 = arith.muli %c1_i32_14, %c128_i32_15 : i32
    %68 = tpu.assume_multiple %67, 128 : i32
    %c0_16 = arith.constant 0 : index
    %c0_17 = arith.constant 0 : index
    %69 = arith.index_cast %68 : i32 to index
    %70 = vector.load %arg3[%c0_16, %c0_17, %69] : memref<1x4x256xf32, #tpu.memory_space<vmem>>, vector<1x4x128xf32>
    %71 = vector.shape_cast %70 : vector<1x4x128xf32> to vector<4x128xf32>
    %c0_18 = arith.constant 0 : index
    %c0_19 = arith.constant 0 : index
    %72 = arith.index_cast %68 : i32 to index
    %73 = vector.load %arg4[%c0_18, %c0_19, %72] : memref<1x1x256xi8, #tpu.memory_space<vmem>>, vector<1x1x128xi8>
    %74 = vector.shape_cast %73 : vector<1x1x128xi8> to vector<1x128xi8>
    %75 = arith.extsi %74 : vector<1x128xi8> to vector<1x128xi32>
    %76 = arith.addi %5, %68 : i32
    %77 = tpu.iota {dimensions = array<i32: 1>} : vector<1x128xi32>
    %78 = vector.broadcast %76 : i32 to vector<1x128xi32>
    %79 = arith.addi %78, %77 : vector<1x128xi32>
    %c256_i32_20 = arith.constant 256 : i32
    %80 = vector.broadcast %c256_i32_20 : i32 to vector<1x128xi32>
    %81 = arith.cmpi slt, %79, %80 : vector<1x128xi32>
    %82 = arith.extui %81 : vector<1x128xi1> to vector<1x128xi32>
    %83 = arith.sitofp %82 : vector<1x128xi32> to vector<1x128xf32>
    %cst_21 = arith.constant 0.000000e+00 : f32
    %84 = vector.shape_cast %81 : vector<1x128xi1> to vector<1x128xi1>
    %85 = vector.broadcast %84 : vector<1x128xi1> to vector<4x128xi1>
    %86 = vector.broadcast %cst_21 : f32 to vector<4x128xf32>
    %87 = arith.select %85, %71, %86 : vector<4x128xi1>, vector<4x128xf32>
    %c-1_i32_22 = arith.constant -1 : i32
    %88 = vector.broadcast %c-1_i32_22 : i32 to vector<1x128xi32>
    %89 = arith.select %81, %75, %88 : vector<1x128xi1>, vector<1x128xi32>
    %90 = tpu.iota {dimensions = array<i32: 0>} : vector<4x128xi32>
    %91 = vector.broadcast %89 : vector<1x128xi32> to vector<4x128xi32>
    %92 = arith.cmpi eq, %91, %90 : vector<4x128xi32>
    %93 = arith.extui %92 : vector<4x128xi1> to vector<4x128xi32>
    %94 = arith.sitofp %93 : vector<4x128xi32> to vector<4x128xf32>
    %95 = arith.mulf %94, %87 : vector<4x128xf32>
    %cst_23 = arith.constant dense<0.000000e+00> : vector<4xf32>
    %96 = vector.multi_reduction <add>, %95, %cst_23 [1] : vector<4x128xf32> to vector<4xf32>
    %97 = vector.shape_cast %96 : vector<4xf32> to vector<4x1xf32>
    %cst_24 = arith.constant dense<0.000000e+00> : vector<4xf32>
    %98 = vector.multi_reduction <add>, %94, %cst_24 [1] : vector<4x128xf32> to vector<4xf32>
    %99 = vector.shape_cast %98 : vector<4xf32> to vector<4x1xf32>
    %cst_25 = arith.constant dense<0xFF800000> : vector<128xf32>
    %100 = vector.multi_reduction <maximumf>, %87, %cst_25 [0] : vector<4x128xf32> to vector<128xf32>
    %101 = vector.shape_cast %100 : vector<128xf32> to vector<1x128xf32>
    %102 = vector.broadcast %101 : vector<1x128xf32> to vector<4x128xf32>
    %103 = arith.subf %87, %102 : vector<4x128xf32>
    %104 = math.exp %103 : vector<4x128xf32>
    %cst_26 = arith.constant dense<0.000000e+00> : vector<128xf32>
    %105 = vector.multi_reduction <add>, %104, %cst_26 [0] : vector<4x128xf32> to vector<128xf32>
    %106 = vector.shape_cast %105 : vector<128xf32> to vector<1x128xf32>
    %107 = tpu.reciprocal %106 {approx = true} : vector<1x128xf32> -> vector<1x128xf32>
    %108 = arith.mulf %107, %83 : vector<1x128xf32>
    %109 = vector.broadcast %108 : vector<1x128xf32> to vector<4x128xf32>
    %110 = arith.mulf %104, %109 : vector<4x128xf32>
    %111 = math.log %106 : vector<1x128xf32>
    %112 = arith.addf %101, %111 : vector<1x128xf32>
    %113 = arith.mulf %110, %94 : vector<4x128xf32>
    %cst_27 = arith.constant dense<0.000000e+00> : vector<4xf32>
    %114 = vector.multi_reduction <add>, %113, %cst_27 [1] : vector<4x128xf32> to vector<4xf32>
    %115 = vector.shape_cast %114 : vector<4xf32> to vector<4x1xf32>
    %cst_28 = arith.constant dense<0.000000e+00> : vector<4xf32>
    %116 = vector.multi_reduction <add>, %110, %cst_28 [1] : vector<4x128xf32> to vector<4xf32>
    %117 = vector.shape_cast %116 : vector<4xf32> to vector<4x1xf32>
    %118 = vector.broadcast %112 : vector<1x128xf32> to vector<4x128xf32>
    %119 = arith.mulf %94, %118 : vector<4x128xf32>
    %cst_29 = arith.constant dense<0.000000e+00> : vector<4xf32>
    %120 = vector.multi_reduction <add>, %119, %cst_29 [1] : vector<4x128xf32> to vector<4xf32>
    %121 = vector.shape_cast %120 : vector<4xf32> to vector<4x1xf32>
    %122 = arith.subf %121, %97 : vector<4x1xf32>
    %123 = arith.addf %63, %115 : vector<4x1xf32>
    %124 = arith.addf %64, %117 : vector<4x1xf32>
    %125 = arith.addf %65, %99 : vector<4x1xf32>
    %126 = arith.addf %66, %122 : vector<4x1xf32>
    %c2_i32 = arith.constant 2 : i32
    %127 = tpu.iota {dimensions = array<i32: 1>} : vector<4x128xi32>
    %c0_i32_30 = arith.constant 0 : i32
    %128 = vector.broadcast %c0_i32_30 : i32 to vector<4x128xi32>
    %129 = arith.cmpi eq, %127, %128 : vector<4x128xi32>
    %cst_31 = arith.constant 0.000000e+00 : f32
    %130 = vector.shape_cast %123 : vector<4x1xf32> to vector<4x1xf32>
    %131 = vector.broadcast %130 : vector<4x1xf32> to vector<4x128xf32>
    %132 = vector.broadcast %cst_31 : f32 to vector<4x128xf32>
    %133 = arith.select %129, %131, %132 : vector<4x128xi1>, vector<4x128xf32>
    %c1_i32_32 = arith.constant 1 : i32
    %134 = vector.broadcast %c1_i32_32 : i32 to vector<4x128xi32>
    %135 = arith.cmpi eq, %127, %134 : vector<4x128xi32>
    %cst_33 = arith.constant 0.000000e+00 : f32
    %136 = vector.shape_cast %124 : vector<4x1xf32> to vector<4x1xf32>
    %137 = vector.broadcast %136 : vector<4x1xf32> to vector<4x128xf32>
    %138 = vector.broadcast %cst_33 : f32 to vector<4x128xf32>
    %139 = arith.select %135, %137, %138 : vector<4x128xi1>, vector<4x128xf32>
    %140 = arith.addf %133, %139 : vector<4x128xf32>
    %c2_i32_34 = arith.constant 2 : i32
    %141 = vector.broadcast %c2_i32_34 : i32 to vector<4x128xi32>
    %142 = arith.cmpi eq, %127, %141 : vector<4x128xi32>
    %cst_35 = arith.constant 0.000000e+00 : f32
    %143 = vector.shape_cast %125 : vector<4x1xf32> to vector<4x1xf32>
    %144 = vector.broadcast %143 : vector<4x1xf32> to vector<4x128xf32>
    %145 = vector.broadcast %cst_35 : f32 to vector<4x128xf32>
    %146 = arith.select %142, %144, %145 : vector<4x128xi1>, vector<4x128xf32>
    %147 = arith.addf %140, %146 : vector<4x128xf32>
    %c3_i32 = arith.constant 3 : i32
    %148 = vector.broadcast %c3_i32 : i32 to vector<4x128xi32>
    %149 = arith.cmpi eq, %127, %148 : vector<4x128xi32>
    %cst_36 = arith.constant 0.000000e+00 : f32
    %150 = vector.shape_cast %126 : vector<4x1xf32> to vector<4x1xf32>
    %151 = vector.broadcast %150 : vector<4x1xf32> to vector<4x128xf32>
    %152 = vector.broadcast %cst_36 : f32 to vector<4x128xf32>
    %153 = arith.select %149, %151, %152 : vector<4x128xi1>, vector<4x128xf32>
    %154 = arith.addf %147, %153 : vector<4x128xf32>
    %c0_37 = arith.constant 0 : index
    %c0_38 = arith.constant 0 : index
    %c0_39 = arith.constant 0 : index
    %c0_40 = arith.constant 0 : index
    %155 = vector.load %arg5[%c0_37, %c0_38, %c0_39, %c0_40] : memref<1x1x4x128xf32, #tpu.memory_space<vmem>>, vector<1x1x4x128xf32>
    %156 = vector.shape_cast %154 : vector<4x128xf32> to vector<1x1x4x128xf32>
    %157 = arith.addf %155, %156 : vector<1x1x4x128xf32>
    %c0_41 = arith.constant 0 : index
    %c0_42 = arith.constant 0 : index
    %c0_43 = arith.constant 0 : index
    %c0_44 = arith.constant 0 : index
    %158 = vector.load %arg5[%c0_41, %c0_42, %c0_43, %c0_44] : memref<1x1x4x128xf32, #tpu.memory_space<vmem>>, vector<1x1x4x128xf32>
    tpu.vector_store %arg5[%c0_41, %c0_42, %c0_43, %c0_44], %157 {strides = array<i32>} : memref<1x1x4x128xf32, #tpu.memory_space<vmem>>, vector<1x1x4x128xf32>,
    return
  }
  func.func @transform_0(%arg0: i32, %arg1: i32, %arg2: i32) -> (i32, i32, i32) {
    %c1_i32 = arith.constant 1 : i32
    %0 = arith.muli %arg0, %c1_i32 : i32
    %1 = arith.addi %0, %arg2 : i32
    %c0_i32 = arith.constant 0 : i32
    %c0_i32_0 = arith.constant 0 : i32
    return %arg1, %c0_i32, %1 : i32, i32, i32
  }
  func.func @transform_1(%arg0: i32, %arg1: i32, %arg2: i32) -> (i32, i32, i32) {
    %c1_i32 = arith.constant 1 : i32
    %0 = arith.muli %arg0, %c1_i32 : i32
    %1 = arith.addi %0, %arg2 : i32
    %c0_i32 = arith.constant 0 : i32
    %c0_i32_0 = arith.constant 0 : i32
    return %arg1, %c0_i32, %1 : i32, i32, i32
  }
  func.func @transform_2(%arg0: i32, %arg1: i32, %arg2: i32) -> (i32, i32, i32, i32) {
    %c0_i32 = arith.constant 0 : i32
    %c0_i32_0 = arith.constant 0 : i32
    %c0_i32_1 = arith.constant 0 : i32
    return %arg0, %arg1, %c0_i32, %c0_i32_0 : i32, i32, i32, i32
  }
}

</mosaic_0001>

<bundles_post_ra>
// kernel: tpu_custom_call.1
= control target key start
LH: loop header
LB: loop body
LE: loop exit
PB: predicated region body
PF: predicated region fallthrough
CT: control target
= control target key end

     0   :  { %7 = vsyncpa [#allocation3], 0  ;;  %s903_s0 = inlined_call_operand.hbm [shape: f32[2,4,256], index: 0, kind: input, shape index: {}]   ;;  %s904_s1 = inlined_call_operand.vmem [shape: s8[2,1,256], index: 1, kind: input, shape index: {}]   ;;  %s905_s2 = inlined_call_operand.hbm [shape: f32[1,2,4,128], index: 2, kind: output, shape index: {}]  }
   0x1   :  { %9 = vsyncpa [#allocation3 + $0x1], 0 }
   0x2   :  { %10 = vsyncpa [#allocation4], 0 }
   0x3   :  { %12 = vsyncpa [#allocation4 + $0x1], 0  ;;  %s729_s9 = smov 0   ;;  %s731_s10 = smov 0  }
   0x4   :  { %s733_s11 = smov 0   ;;  %s735_s12 = smov 0  }
   0x5   :  { %s737_s13 = smov 0   ;;  %s739_s14 = smov 0  }
   0x6 LB: > { %s506_s15 = sadd.s32 4294967295, %s709_s14   ;;  %s507_s16 = sadd.s32 4294967294, %s709_s14   ;;  %s709_s14 = sphi %s739_s14, %s18_s14   ;;  %s705_s13 = sphi %s737_s13, %s917_s13   ;;  %s701_s12 = sphi %s735_s12, %s916_s12   ;;  %s697_s11 = sphi %s733_s11, %s915_s11   ;;  %s693_s10 = sphi %s731_s10, %s914_s10   ;;  %s689_s9 = sphi %s729_s9, %s913_s9  }
   0x7   : > { %s33_s17 = sadd.s32 1, %s705_s13  ;;  %s48_s18 = sadd.s32 1, %s697_s11 }
   0x8   : > { %p35_p0 = scmp.ge.s32.totalorder %s33_s17, 2  ;;  %p55_p1 = scmp.ne.s32.totalorder %s697_s11, %s693_s10 }
   0x9   : > { %p56_p2 = scmp.eq.s32.totalorder %s709_s14, 0  ;;  %p61_p3 = scmp.ne.s32.totalorder %s693_s10, %s689_s9 }
   0xa   : > { %s919_s17 = smov (%p35_p0, %s33_s17), 0  ;;  %p62_p5 = scmp.eq.s32.totalorder %s506_s15, 0 }
   0xb   : > { %p770_p4 = por %p56_p2, %p55_p1  ;;  %s43_s20 = ssub.s32 %s705_s13, %s919_s17 }
   0xc   : > { %p117_p6 = scmp.eq.s32.totalorder %s506_s15, 1  ;;  %p46_p7 = scmp.eq.s32.totalorder %s43_s20, 0 }
   0xd   : > { %p776_p8 = por %p62_p5, %p61_p3  ;;  %p123_p10 = scmp.eq.s32.totalorder %s507_s16, 1 }
   0xe   : > { %p780_p9 = por %p117_p6, %p55_p1  ;;  %p538_p13 = scmp.lt.s32.totalorder %s709_s14, 2 }
   0xf   : > { %s785_s23 = scalar_select %p46_p7, %s697_s11, %s48_s18  }
  0x10   : > { %p787_p11 = por %p123_p10, %p61_p3  ;;  %s143_s25 = sand.u32 1, %s697_s11  }
  0x11   : > { %s510_s26 = sshll.u32 %s143_s25, 3  ;;  %s525_s27 = sshll.u32 %s705_s13, 7 }
  0x12   : > { %s909_s24 = scalar_select %p787_p11, 1, 0 }
  0x13   : > { %s156_s30 = scalar_lea.hbm %s903_s0, %s525_s27  ;;  %s147_s3 = scalar_lea.vmem [#allocation2], %s510_s26 }
  0x14   : > { %s158_s4 = sshll.u32 %s147_s3, 4  ;;  %p800_p0 = pnand %p538_p13, %p770_p4  ;;  %s159_s4 = int_to_ptr.vmem [resolvable:$true] %s158_s4 }
  0x15   : > { %p513_p1 = scmp.ge.s32.totalorder %s709_s14, 1  ;;  %p177_p2 = scmp.lt.s32.totalorder %s709_s14, 3 }
  0x16   : > { %s144_s6 = scalar_lea.sflag [#allocation3], %s143_s25  ;;  %p603_p3 = pneg %p800_p0 }
  0x17   : > { %s614_s7 = scalar_lea.vmem %s159_s4, 128  ;;  %s711_s8 = smov [#allocation2]  }
  0x18   : > { %p615_p5 = scmp.ne.s32.totalorder %s159_s4, %s614_s7  ;;  %s619_s15 = sshll.u32 %s711_s8, 4  ;;  %s620_s15 = int_to_ptr.vmem [resolvable:$false] %s619_s15 }
  0x19   : > { %s621_s16 = scalar_lea.vmem %s620_s15, 256  ;;  %p622_p10 = scmp.lt.s32.totalorder %s159_s4, %s620_s15 }
  0x1a   : > { %p617_p6 = pnand %p615_p5, %p603_p3  ;;  %p623_p12 = scmp.lt.s32.totalorder %s621_s16, %s614_s7 }
  0x1c   : > { %p618_p7 = pneg %p617_p6  ;;  %p624_p4 = por %p623_p12, %p622_p10 }
  0x1e   : > { %p625_p13 = pnand %p624_p4, %p618_p7 }
  0x20   : > { %628 = shalt.err (!%p625_p13)
}
  0x21   : > { %533 = dma.hbm_to_vmem [thread:$0]  (!%p800_p0), %s156_s30, 128, %s159_s4, %s144_s6  }
  0x22   : > { %p178_p11 = pnand %p513_p1, %p177_p2 }
  0x23   : > { %s815_s18 = sand.u32 (!%p178_p11), 1, %s693_s10  }
  0x24   : > { %181 = sbr.rel (%p178_p11) target bundleno = 278 (0x116), region = 28  ;;  %s514_s19 = sshll.u32 (!%p178_p11), %s815_s18, 3 }
  0x25   : > { %s184_s20 = scalar_lea.sflag (!%p178_p11), [#allocation3], %s815_s18  ;;  %s187_s25 = scalar_lea.vmem (!%p178_p11), [#allocation2], %s514_s19 }
  0x29   : > { %680 = dma.done.wait (%p776_p8), %s184_s20, 128  }
  0x2a   : > { %682 = vsyncadd (%p776_p8), %s184_s20, 4294967168  ;;  %s515_s26 = sshll.u32 %s815_s18, 2  ;;  %p221_p12 = scmp.lt.s32.totalorder %s701_s12, 1  ;;  %v241_v0 = vlaneseq  ;;  %v712_v2 = vmov 0.0   ;;  %vm261_vm0 = vcmask 1043456  }
  0x2b   : > { %s827_s28 = scalar_lea.vmem [#allocation5], %s515_s26  ;;  %v518_v6 = vld [vmem:[%s187_s25 + $0x4] sm:$0xf]  ;;  %v237_v10 = vld [vmem:[%s187_s25] sm:$0xf]  ;;  %s522_s4 = sshll.u32 %s701_s12, 6 }
  0x2c   : > { %s222_s27 = scalar_select %p221_p12, %s701_s12, 1  ;;  %v252_v1 = vshrl.u32 %v241_v0, 7  ;;  %234 = vst [vmem:[%s827_s28] sm:$0xf] %v712_v2  ;;  %v335_v9 = vsel %vm261_vm0, %v518_v6, -inf  ;;  %v268_v12 = vsel %vm261_vm0, %v237_v10, -inf }
  0x2d   : > { %v336_v11 = vrot.slane %v335_v9, 4  ;;  %v269_v15 = vrot.slane %v268_v12, 4  ;;  %s404_s5 = sshll.u32 %s827_s28, 4  ;;  %s402_s8 = scalar_lea.hbm %s905_s2, %s522_s4  ;;  %s405_s5 = int_to_ptr.vmem [resolvable:$true] %s404_s5 }
  0x2e   : > { %s516_s29 = sshll.u32 %s222_s27, 1  ;;  %v255_v3 = vsub.s32 0, %v252_v1  ;;  %s389_s15 = scalar_lea.sflag [#allocation4], %s815_s18 }
  0x2f   : > { %s227_s21 = scalar_lea.vmem %s904_s1, %s516_s29  ;;  %v337_v16 = vmax.f32 %v335_v9, %v336_v11  ;;  %v270_v17 = vmax.f32 %v268_v12, %v269_v15  ;;  %s629_s16 = scalar_lea.vmem %s405_s5, 64 }
  0x30   : > { %v238_v4 = vld [vmem:[%s227_s21] sm:$0x1]  ;;  %v519_v5 = vld [vmem:[%s227_s21 + $0x1] sm:$0x1]  ;;  %p630_p8 = scmp.ne.s32.totalorder %s405_s5, %s629_s16  ;;  %s713_s19 = smov [#allocation5]  }
  0x31   : > { %v239_v7 = vunpack.c.0.s8 %v238_v4  ;;  %v311_v8 = vunpack.c.0.s8 %v519_v5  ;;  %v338_v20 = vrot.slane %v337_v16, 2  ;;  %v271_v24 = vrot.slane %v270_v17, 2  ;;  %s633_s20 = sshll.u32 %s713_s19, 4  ;;  %s634_s20 = int_to_ptr.vmem [resolvable:$false] %s633_s20 }
  0x32   : > { %p631_p11 = pnand %p630_p8, %p780_p9  ;;  %s635_s25 = scalar_lea.vmem %s634_s20, 128 }
  0x33   : > { %v256_v13 = vrot.slane %v239_v7, %v255_v3  ;;  %v324_v14 = vrot.slane %v311_v8, %v255_v3  ;;  %v339_v25 = vmax.f32 %v337_v16, %v338_v20  ;;  %v272_v28 = vmax.f32 %v270_v17, %v271_v24  ;;  %p636_p1 = scmp.lt.s32.totalorder %s405_s5, %s634_s20  ;;  %p637_p2 = scmp.lt.s32.totalorder %s635_s25, %s629_s16 }
  0x34   : > { %p632_p0 = pneg %p631_p11 }
  0x35   : > { %vm257_vm1 = vcmp.eq.s32.totalorder %v256_v13, %v252_v1  ;;  %vm325_vm2 = vcmp.eq.s32.totalorder %v324_v14, %v252_v1  ;;  %v340_v29 = vrot.slane %v339_v25, 1  ;;  %v273_v30 = vrot.slane %v272_v28, 1  ;;  %p638_p3 = por %p637_p2, %p636_p1 }
  0x36   : > { %v835_v18 = vsel %vm257_vm1, 1.0, %v712_v2  ;;  %v837_v19 = vsel %vm325_vm2, 1.0, %v712_v2 }
  0x37   : > { %v265_v21 = vsel %vm261_vm0, %v835_v18, 0.0  ;;  %v328_v22 = vmul.f32 %v837_v19, %v518_v6  ;;  %v260_v23 = vmul.f32 %v835_v18, %v237_v10  ;;  %v341_v31 = vmax.f32 %v339_v25, %v340_v29  ;;  %p639_p5 = pnand %p638_p3, %p632_p0 }
  0x38   : > { %266 = vadd.xlane.f32.xlu1 %v265_v21  ;;  %v274_v32 = vmax.f32 %v272_v28, %v273_v30 }
  0x39   : > { %v329_v26 = vsel %vm261_vm0, %v328_v22, 0.0  ;;  %v262_v27 = vsel %vm261_vm0, %v260_v23, 0.0  ;;  %v342_v33 = vsub.f32 %v518_v6, %v341_v31 }
  0x3a   : > { %263 = vadd.xlane.f32.xlu0 %v262_v27  ;;  %v275_v34 = vsub.f32 %v237_v10, %v274_v32  ;;  %v332_v10 = vsel %vm261_vm0, %v837_v19, 0.0 }
  0x3b   : > { %v343_v35 = vmul.f32 1.442695, %v342_v33  ;;  %v385_v33 = vld [vmem:[%s827_s28] sm:$0xf] }
  0x3c   : > { %330 = vadd.xlane.f32.xlu1 %v329_v26  ;;  %v276_v36 = vmul.f32 1.442695, %v275_v34 }
  0x3d   : > { %589 = vpow2.f32 %v343_v35 }
  0x3e   : > { %591 = vpow2.f32 %v276_v36 }
  0x4a   : > { %v590_v37 = vpop.eup %589 }
  0x4b   : > { %v592_v38 = vpop.eup %591  ;;  %v345_v39 = vsel %vm261_vm0, %v590_v37, 0.0 }
  0x4c   : > { %v346_v40 = vrot.slane %v345_v39, 4  ;;  %v278_v41 = vsel %vm261_vm0, %v592_v38, 0.0 }
  0x4d   : > { %v279_v42 = vrot.slane %v278_v41, 4 }
  0x4e   : > { %v347_v43 = vadd.f32 %v346_v40, %v345_v39 }
  0x4f   : > { %v280_v44 = vadd.f32 %v279_v42, %v278_v41 }
  0x50   : > { %v348_v45 = vrot.slane %v347_v43, 2 }
  0x51   : > { %v281_v46 = vrot.slane %v280_v44, 2 }
  0x52   : > { %v349_v47 = vadd.f32 %v348_v45, %v347_v43 }
  0x53   : > { %v282_v48 = vadd.f32 %v281_v46, %v280_v44 }
  0x54   : > { %v350_v49 = vrot.slane %v349_v47, 1 }
  0x55   : > { %v283_v50 = vrot.slane %v282_v48, 1 }
  0x56   : > { %v351_v51 = vadd.f32 %v350_v49, %v349_v47 }
  0x57   : > { %v284_v52 = vadd.f32 %v283_v50, %v282_v48 }
  0x58   : > { %593 = vrcp.f32 %v351_v51 }
  0x59   : > { %595 = vrcp.f32 %v284_v52 }
  0x5a   : > { %597 = vlog2.f32 %v351_v51 }
  0x5b   : > { %599 = vlog2.f32 %v284_v52 }
  0x65   : > { %v594_v53 = vpop.eup %593 }
  0x66   : > { %v596_v54 = vpop.eup %595  ;;  %v354_v55 = vmul.f32 %v594_v53, %v590_v37 }
  0x67   : > { %v598_v56 = vpop.eup %597  ;;  %v287_v57 = vmul.f32 %v596_v54, %v592_v38 }
  0x68   : > { %v600_v58 = vpop.eup %599  ;;  %v362_v59 = vsel %vm261_vm0, %v354_v55, 0.0  ;;  %v358_v60 = vmul.f32 %v837_v19, %v354_v55  ;;  %v356_v61 = vmul.f32 0.6931472, %v598_v56 }
  0x69   : > { %363 = vadd.xlane.f32.xlu1 %v362_v59  ;;  %v295_v62 = vsel %vm261_vm0, %v287_v57, 0.0  ;;  %v291_v63 = vmul.f32 %v835_v18, %v287_v57  ;;  %v289_v1 = vmul.f32 0.6931472, %v600_v58 }
  0x6a   : > { %296 = vadd.xlane.f32.xlu0 %v295_v62  ;;  %v359_v2 = vsel %vm261_vm0, %v358_v60, 0.0  ;;  %v357_v3 = vadd.f32 %v356_v61, %v341_v31 }
  0x6b   : > { %v292_v4 = vsel %vm261_vm0, %v291_v63, 0.0  ;;  %v290_v5 = vadd.f32 %v289_v1, %v274_v32 }
  0x6c   : > { %v365_v6 = vmul.f32 %v837_v19, %v357_v3 }
  0x6d   : > { %360 = vadd.xlane.f32.xlu1 %v359_v2  ;;  %v298_v7 = vmul.f32 %v835_v18, %v290_v5  ;;  %v242_v18 = vand.u32 127, %v241_v0 }
  0x6e   : > { %293 = vadd.xlane.f32.xlu0 %v292_v4  ;;  %v366_v8 = vsel %vm261_vm0, %v365_v6, 0.0 }
  0x6f   : > { %v299_v9 = vsel %vm261_vm0, %v298_v7, 0.0  ;;  %vm374_vm3 = vcmp.eq.s32.totalorder %v242_v18, 0  ;;  %vm376_vm4 = vcmp.eq.s32.totalorder %v242_v18, 1  ;;  %vm379_vm5 = vcmp.eq.s32.totalorder %v242_v18, 2 }
  0x70   : > { %vm382_vm6 = vcmp.eq.s32.totalorder %v242_v18, 3 }
  0x71   : > { %367 = vadd.xlane.f32.xlu1 %v366_v8 }
  0x72   : > { %300 = vadd.xlane.f32.xlu0 %v299_v9 }
  0x76   : > { %333 = vadd.xlane.f32.xlu0 %v332_v10 }
  0xc1   : > { %v267_v11 = vpop.xlane.xlu1 %266 }
  0xc3   : > { %v264_v13 = vpop.xlane.xlu0 %263 }
  0xc5   : > { %v331_v12 = vpop.xlane.xlu1 %330 }
  0xf2   : > { %v364_v14 = vpop.xlane.xlu1 %363 }
  0xf3   : > { %v297_v15 = vpop.xlane.xlu0 %296 }
  0xf4   : > { %v371_v23 = vadd.f32 %v364_v14, %v297_v15 }
  0xf6   : > { %v361_v16 = vpop.xlane.xlu1 %360  ;;  %v377_v27 = vsel %vm376_vm4, %v371_v23, 0.0 }
  0xf7   : > { %v294_v17 = vpop.xlane.xlu0 %293 }
  0xf8   : > { %v370_v20 = vadd.f32 %v361_v16, %v294_v17 }
  0xfa   : > { %v368_v21 = vpop.xlane.xlu1 %367  ;;  %v375_v25 = vsel %vm374_vm3, %v370_v20, 0.0 }
  0xfb   : > { %v301_v22 = vpop.xlane.xlu0 %300  ;;  %v369_v24 = vsub.f32 %v368_v21, %v331_v12  ;;  %v378_v0 = vadd.f32 %v377_v27, %v375_v25 }
  0xfc   : > { %v302_v19 = vsub.f32 %v301_v22, %v264_v13 }
  0xfe   : > { %v373_v28 = vadd.f32 %v369_v24, %v302_v19 }
  0xff   : > { %v334_v26 = vpop.xlane.xlu0 %333 }
 0x100   : > { %v372_v29 = vadd.f32 %v334_v26, %v267_v11  ;;  %v383_v32 = vsel %vm382_vm6, %v373_v28, 0.0 }
 0x102   : > { %v380_v30 = vsel %vm379_vm5, %v372_v29, 0.0 }
 0x103   : > { %v381_v31 = vadd.f32 %v380_v30, %v378_v0 }
 0x105   : > { %v384_v34 = vadd.f32 %v383_v32, %v381_v31 }
 0x107   : > { %v386_v35 = vadd.f32 %v385_v33, %v384_v34 }
 0x109   : > { %387 = vst [vmem:[%s827_s28] sm:$0xf] %v386_v35 }
 0x10a   : > { %642 = shalt.err (!%p639_p5)
}
 0x10b   : > { %s643_s12 = scalar_lea.hbm %s402_s8, 64  ;;  %s647_s27 = scalar_lea.hbm %s905_s2, 128 }
 0x10c   : > { %p644_p6 = scmp.ne.s32.totalorder %s402_s8, %s643_s12  ;;  %p648_p4 = scmp.lt.s32.totalorder %s402_s8, %s905_s2 }
 0x10d   : > { %p649_p13 = scmp.lt.s32.totalorder %s647_s27, %s643_s12 }
 0x10e   : > { %p645_p7 = pnand %p644_p6, %p780_p9 }
 0x10f   : > { %p650_p12 = por %p649_p13, %p648_p4 }
 0x110   : > { %p646_p10 = pneg %p645_p7 }
 0x112   : > { %p651_p8 = pnand %p650_p12, %p646_p10 }
 0x114   : > { %654 = shalt.err (!%p651_p8)
}
 0x115   : > { %528 = dma.vmem_to_hbm [thread:$0]  (%p780_p9), %s405_s5, 64, %s402_s8, %s389_s15  }
 0x116 PF: > { %s416_s30 = sand.u32 1, %s689_s9   ;;  %p911_p11 = scmp.ne.s32.totalorder %s909_s24, 0 }
 0x117   : > { %p912_p0 = scmp.ge.s32.totalorder %s709_s14, 2  ;;  %s417_s3 = scalar_lea.sflag [#allocation4], %s416_s30 }
 0x119   : > { %p535_p1 = pnand %p912_p0, %p911_p11 }
 0x11b   : > { %p536_p2 = pneg %p535_p1 }
 0x11d   : > { %684 = dma.done.wait (%p536_p2), %s417_s3, 64  }
 0x11e   : > { %686 = vsyncadd (%p536_p2), %s417_s3, 4294967232  ;;  %s18_s14 = sadd.s32 1, %s709_s14   ;;  %s913_s9 = smov %s693_s10 }
 0x11f   : > { %p15_p3 = scmp.ge.s32.totalorder %s18_s14, 4   ;;  %s914_s10 = smov %s697_s11 }
 0x120   : > { %s915_s11 = smov %s785_s23  ;;  %s916_s12 = smov %s705_s13 }
 0x121   : > { %s917_s13 = smov %s919_s17  ;;  %17 = sbr.rel (!%p15_p3) target bundleno = 6 (0x6), region = 82 }
 0x126   :  { %422 = vsyncpa [#allocation3], 1 }
 0x127   :  { %424 = vsyncpa [#allocation3 + $0x1], 1 }
 0x128   :  { %425 = vsyncpa [#allocation4], 1 }
 0x129   :  { %427 = vsyncpa [#allocation4 + $0x1], 1 }

</bundles_post_ra>
